<compile_context>
chip_gen: v7x
topology: tpu7x:2x2x1
jax: 0.10.0
libtpu: 0.0.40
codegen_flags: <defaults>
</compile_context>

<pallas_src>
import math

import jax
import jax.numpy as jnp
from jax import lax
from jax.experimental import pallas as pl
from jax.experimental.pallas import tpu as pltpu

LANE = 128          # TPU vreg lane width
SUBLANE = 8         # f32 sublane count
BF16_SUBLANE = 16   # bf16 packed sublane tile


def _round_up(x, m):
    return ((x + m - 1) // m) * m


# ----------------------------- Pallas kernel ------------------------------- #

def _make_mlp_kernel(n_cat, vocab_pads, n_rest):
    """Kernel specialized to `n_cat` categorical features and `n_rest` linear
    layers after the first one (the last of those is the sigmoid output layer).

    Activations are kept transposed: [hidden, TB] with the batch on the lane
    axis.  Layer 1 is a single merged matmul: W1_stacked @ [xnum; onehots]."""

    def kernel(*refs):
        it = iter(refs)
        codes_ref = next(it)                        # [n_cat, TB]   int32
        xnum_ref = next(it)                         # [NUM_PAD, TB] bf16
        w1_ref = next(it)                           # [H1_PAD, K1_PAD] bf16 (stacked)
        b1_ref = next(it)                           # [H1_PAD, 1] f32
        rest = [(next(it), next(it)) for _ in range(n_rest)]
        o_ref = next(it)                            # [1, TB] f32 (lane-dense logits)

        tb = codes_ref.shape[1]

        # ---- layer 1: embedding lookup folded into ONE merged matmul --------
        #   W1_stacked @ [ xnum ; onehot_0 ; ... ; onehot_{n_cat-1} ]
        # where (W1_f @ E_f^T) @ onehot_f == W1_f @ E_f[code_f]^T.
        pieces = [xnum_ref[...]]
        for f in range(n_cat):
            c = codes_ref[f:f + 1, :]                                   # [1, TB]
            iota = lax.broadcasted_iota(jnp.int32, (vocab_pads[f], tb), 0)
            pieces.append((c == iota).astype(jnp.bfloat16))             # [Vp_f, TB]
        feat = jnp.concatenate(pieces, axis=0) if len(pieces) > 1 else pieces[0]

        z = jnp.dot(w1_ref[...], feat,
                    preferred_element_type=jnp.float32) + b1_ref[...]
        h = jnp.maximum(z, 0.0)                                         # fp32 relu

        # ---- layers 2..N (relu) and the sigmoid output layer ----------------
        for li, (w_ref, b_ref) in enumerate(rest):
            z = jnp.dot(w_ref[...], h.astype(jnp.bfloat16),
                        preferred_element_type=jnp.float32) + b_ref[...]
            if li < n_rest - 1:
                h = jnp.maximum(z, 0.0)
            else:
                # sigmoid on the single real logit row only; lane-dense store.
                o_ref[...] = jax.nn.sigmoid(z[0:1, :])

    return kernel


# --------------------------- Model (params + glue) -------------------------- #

class EntEmbNNRegressionPallas:
    """JAX/Pallas re-implementation of EntEmbNNRegression.forward.

    cat_vocab_sizes : #classes per categorical feature
    cat_emb_dims    : embedding dim per categorical feature
    n_num_features  : number of numeric (bypass) features
    dense_layers    : hidden layer sizes (relu); output layer (width 1) -> sigmoid
    """

    def __init__(self, key, cat_vocab_sizes, cat_emb_dims, n_num_features,
                 dense_layers=(32, 16)):
        assert len(dense_layers) >= 1, "need at least one hidden layer"
        assert len(cat_vocab_sizes) >= 1, "need at least one categorical feature"
        self.cat_vocab_sizes = list(cat_vocab_sizes)
        self.cat_emb_dims = list(cat_emb_dims)
        self.n_num_features = n_num_features
        self.dense_layers = list(dense_layers)

        n_cat = len(self.cat_vocab_sizes)
        keys = jax.random.split(key, n_cat + 2 * (len(self.dense_layers) + 1))
        k_iter = iter(keys)

        # Embeddings: torch.nn.init.uniform_(weight, a=-0.05, b=0.05)
        self.embeddings = []
        for vocab, dim in zip(self.cat_vocab_sizes, self.cat_emb_dims):
            self.embeddings.append(
                jax.random.uniform(next(k_iter), (vocab, dim),
                                   minval=-0.05, maxval=0.05, dtype=jnp.float32))

        # Dense layers in torch orientation: weight [out, in], bias [out].
        # nn.Linear default init U(-1/sqrt(in), 1/sqrt(in)).
        input_size = sum(self.cat_emb_dims) + n_num_features
        arch = [input_size] + self.dense_layers + [1]
        self.weights, self.biases = [], []
        for in_sz, out_sz in zip(arch[:-1], arch[1:]):
            bound = 1.0 / math.sqrt(in_sz)
            self.weights.append(
                jax.random.uniform(next(k_iter), (out_sz, in_sz),
                                   minval=-bound, maxval=bound, dtype=jnp.float32))
            self.biases.append(
                jax.random.uniform(next(k_iter), (out_sz,),
                                   minval=-bound, maxval=bound, dtype=jnp.float32))

        self._prepare_kernel_params()

    # -- one-time padding / folding of parameters into kernel-friendly form --
    def _prepare_kernel_params(self):
        n_cat = len(self.cat_vocab_sizes)
        h1 = self.dense_layers[0]

        # bf16 contraction dims rounded to 16 (bf16 min sublane tile).
        self._vocab_pads = [_round_up(v, BF16_SUBLANE) for v in self.cat_vocab_sizes]
        self._num_pad = _round_up(max(self.n_num_features, 1), BF16_SUBLANE)
        self._h_pads = [_round_up(h, LANE) for h in self.dense_layers]
        self._out_rows = SUBLANE            # width-1 logit row padded to 8 rows
        h1_pad = self._h_pads[0]

        w1 = self.weights[0]                # [H1, D_in], D_in = sum(emb) + n_num
        b1 = self.biases[0]                 # [H1]
        d_cat = sum(self.cat_emb_dims)

        # Stacked layer-1 table, column blocks: [ numeric | cat_0 | cat_1 | ... ]
        blocks = []
        wn = w1[:, d_cat:]                                          # [H1, n_num]
        blocks.append(jnp.pad(wn, ((0, h1_pad - h1),
                                   (0, self._num_pad - wn.shape[1]))))
        off = 0
        for f in range(n_cat):
            d = self.cat_emb_dims[f]
            p = w1[:, off:off + d] @ self.embeddings[f].T           # [H1, vocab_f]
            blocks.append(jnp.pad(p, ((0, h1_pad - h1),
                                      (0, self._vocab_pads[f] - p.shape[1]))))
            off += d
        # NOTE: folded tables kept f32 until here; single bf16 rounding at the end.
        self._w1 = jnp.concatenate(blocks, axis=1).astype(jnp.bfloat16)
        self._b1 = jnp.pad(b1, (0, h1_pad - h1)).reshape(h1_pad, 1).astype(jnp.float32)
        self._k1_pad = self._w1.shape[1]

        # Remaining layers, zero padded (pad channels stay inert through relu;
        # only the real logit row of the final layer is read in the kernel).
        self._rest = []
        n_layers = len(self.weights)
        for j in range(1, n_layers):
            w, b = self.weights[j], self.biases[j]
            in_pad = self._h_pads[j - 1]
            out_pad = self._h_pads[j] if j < n_layers - 1 else self._out_rows
            wp = jnp.pad(w, ((0, out_pad - w.shape[0]),
                             (0, in_pad - w.shape[1]))).astype(jnp.bfloat16)
            bp = jnp.pad(b, (0, out_pad - b.shape[0])).reshape(out_pad, 1)
            self._rest.append((wp, bp.astype(jnp.float32)))

    # ------------------------------ pallas call ------------------------------
    def _mlp_pallas(self, codes_t, xnum_t, tb, b_pad):
        n_cat = codes_t.shape[0]
        grid = (b_pad // tb,)

        arrays = [codes_t, xnum_t, self._w1, self._b1]
        for w, b in self._rest:
            arrays += [w, b]

        in_specs = [
            pl.BlockSpec((n_cat, tb), lambda i: (0, i)),            # codes tile
            pl.BlockSpec((self._num_pad, tb), lambda i: (0, i)),    # numeric tile
        ]
        # Grid-invariant weights/tables: full block, constant index_map.
        # (For huge vocabularies these folded tables would blow VMEM — see TODO
        #  in forward(); pl.Buffered(1) / HBM gather would be the next step.)
        in_specs += [pl.BlockSpec(a.shape, lambda i: (0, 0)) for a in arrays[2:]]

        # Advisory cost estimate so XLA schedules around the custom call sanely.
        per_col = 2 * self._h_pads[0] * self._k1_pad
        for w, _ in self._rest:
            per_col += 2 * w.shape[0] * w.shape[1]
        cost = pl.CostEstimate(
            flops=int(b_pad * per_col),
            transcendentals=int(b_pad),                 # one sigmoid per row
            bytes_accessed=int(sum(a.nbytes for a in arrays) + b_pad * 4),
        )

        kernel = _make_mlp_kernel(n_cat, tuple(self._vocab_pads), len(self._rest))

        return pl.pallas_call(
            kernel,
            out_shape=jax.ShapeDtypeStruct((1, b_pad), jnp.float32),
            grid=grid,
            in_specs=in_specs,
            out_specs=pl.BlockSpec((1, tb), lambda i: (0, i)),
            compiler_params=pltpu.CompilerParams(
                dimension_semantics=("parallel",)),     # batch axis -> v7x megacore
            cost_estimate=cost,
        )(*arrays)

    # -------------------------------- forward --------------------------------
    def forward(self, x, batch_tile=None):
        """x: [B, n_cat + n_num] float32; first n_cat columns hold integer codes."""
        n_cat = len(self.cat_vocab_sizes)
        b = x.shape[0]

        # TODO(synk): codes arrive as float (like the torch dataloader); exact
        # only for non-negative codes < 2^24 — pass an int array for huge vocabs.
        # TODO(synk): for vocab >> ~2k, switch that feature from one-hot matmul
        # to an HBM-resident embedding table with per-tile row-gather DMA.
        codes = x[:, :n_cat].astype(jnp.int32)                       # [B, n_cat]
        xnum = x[:, n_cat:].astype(jnp.float32)
        xnum = jnp.pad(xnum, ((0, 0), (0, self._num_pad - xnum.shape[1])))
        xnum = xnum.astype(jnp.bfloat16)

        if batch_tile is None:
            # >=2 grid steps for moderate B (feed both v7x TensorCores), and
            # tiles up to 1024 for large B to amortize per-step overhead.
            tb = max(LANE, _round_up(_round_up(b, LANE) // 2, LANE))
            tb = min(tb, 1024)
        else:
            tb = _round_up(batch_tile, LANE)
        b_pad = _round_up(b, tb)

        # Feature-major (transposed) layout: batch on the lane axis.
        codes_t = jnp.pad(codes, ((0, b_pad - b), (0, 0))).T         # [n_cat, B_pad]
        xnum_t = jnp.pad(xnum, ((0, b_pad - b), (0, 0))).T           # [NUM_PAD, B_pad]

        out = self._mlp_pallas(codes_t, xnum_t, tb, b_pad)           # [1, B_pad]
        return out[:, :b].reshape(b, 1)                              # free reshape

    # ----------------------- pure-JAX fp32 reference -------------------------
    def forward_ref(self, x):
        n_cat = len(self.cat_vocab_sizes)
        pieces = []
        for f, emb in enumerate(self.embeddings):
            codes = x[:, f].astype(jnp.int32)
            pieces.append(jnp.take(emb, codes, axis=0))
        if self.n_num_features > 0:
            pieces.append(x[:, n_cat:])
        h = jnp.concatenate(pieces, axis=1).astype(jnp.float32)
        for i, (w, b) in enumerate(zip(self.weights, self.biases)):
            h = h @ w.T + b
            if i < len(self.dense_layers):
                h = jnp.maximum(h, 0.0)
            else:
                h = jax.nn.sigmoid(h)
        return h


# ----------------------------------- main ----------------------------------- #

if __name__ == "__main__":
    key = jax.random.PRNGKey(0)
    k_model, k_cat0, k_cat1, k_num = jax.random.split(key, 4)

    # Small synthetic config: 2 categorical features, 5 numeric features.
    cat_vocab_sizes = [10, 7]
    cat_emb_dims = [4, 3]
    n_num = 5
    batch = 16

    model = EntEmbNNRegressionPallas(
        k_model, cat_vocab_sizes, cat_emb_dims, n_num, dense_layers=[32, 16])

    # Input like the torch dataloader: float tensor, first n_cat columns are
    # integer category codes, remaining columns are scaled numerics.
    codes0 = jax.random.randint(k_cat0, (batch, 1), 0, cat_vocab_sizes[0]).astype(jnp.float32)
    codes1 = jax.random.randint(k_cat1, (batch, 1), 0, cat_vocab_sizes[1]).astype(jnp.float32)
    num = jax.random.uniform(k_num, (batch, n_num), dtype=jnp.float32)
    x = jnp.concatenate([codes0, codes1, num], axis=1)        # [16, 7]

    out = jax.block_until_ready(model.forward(x))
    ref = model.forward_ref(x)
    assert out.shape == (batch, 1), out.shape
    err = float(jnp.max(jnp.abs(out - ref)))
    assert err < 2e-2, err     # bf16 matmul operands vs fp32 reference

    # Also exercise the multi-tile grid path (3 batch tiles of 128, padded tail).
    k2a, k2b, k2c = jax.random.split(jax.random.PRNGKey(1), 3)
    batch2 = 300
    x2 = jnp.concatenate([
        jax.random.randint(k2a, (batch2, 1), 0, cat_vocab_sizes[0]).astype(jnp.float32),
        jax.random.randint(k2b, (batch2, 1), 0, cat_vocab_sizes[1]).astype(jnp.float32),
        jax.random.uniform(k2c, (batch2, n_num), dtype=jnp.float32)], axis=1)
    out2 = jax.block_until_ready(model.forward(x2, batch_tile=128))
    ref2 = model.forward_ref(x2)
    assert out2.shape == (batch2, 1), out2.shape
    err2 = float(jnp.max(jnp.abs(out2 - ref2)))
    assert err2 < 2e-2, err2

    print("KERNEL_OK")
</pallas_src>

<mosaic_0001>
module attributes {stable_mosaic.version = 11 : i64} {
  func.func @kernel(%arg0: i32, %arg1: memref<2x128xi32, #tpu.memory_space<vmem>>, %arg2: memref<16x128xbf16, #tpu.memory_space<vmem>>, %arg3: memref<128x48xbf16, #tpu.memory_space<vmem>>, %arg4: memref<128x1xf32, #tpu.memory_space<vmem>>, %arg5: memref<128x128xbf16, #tpu.memory_space<vmem>>, %arg6: memref<128x1xf32, #tpu.memory_space<vmem>>, %arg7: memref<8x128xbf16, #tpu.memory_space<vmem>>, %arg8: memref<8x1xf32, #tpu.memory_space<vmem>>, %arg9: memref<1x128xf32, #tpu.memory_space<vmem>>) attributes {dimension_semantics = [#tpu.dimension_semantics<parallel>], iteration_bounds = array<i64: 1>, scalar_prefetch = 0 : i64, scratch_operands = 0 : i64, tpu.core_type = #tpu.core_type<tc>, window_params = [{transform_indices = @transform_0, window_bounds = array<i64: 2, 128>}, {transform_indices = @transform_1, window_bounds = array<i64: 16, 128>}, {pipeline_mode = #tpu.pipeline_mode<synchronous>, transform_indices = @transform_2, window_bounds = array<i64: 128, 48>}, {pipeline_mode = #tpu.pipeline_mode<synchronous>, transform_indices = @transform_3, window_bounds = array<i64: 128, 1>}, {pipeline_mode = #tpu.pipeline_mode<synchronous>, transform_indices = @transform_4, window_bounds = array<i64: 128, 128>}, {pipeline_mode = #tpu.pipeline_mode<synchronous>, transform_indices = @transform_5, window_bounds = array<i64: 128, 1>}, {pipeline_mode = #tpu.pipeline_mode<synchronous>, transform_indices = @transform_6, window_bounds = array<i64: 8, 128>}, {pipeline_mode = #tpu.pipeline_mode<synchronous>, transform_indices = @transform_7, window_bounds = array<i64: 8, 1>}, {transform_indices = @transform_8, window_bounds = array<i64: 1, 128>}]} {
    %c0 = arith.constant 0 : index
    %c0_0 = arith.constant 0 : index
    %0 = vector.load %arg2[%c0, %c0_0] : memref<16x128xbf16, #tpu.memory_space<vmem>>, vector<16x128xbf16>
    %c0_1 = arith.constant 0 : index
    %c0_2 = arith.constant 0 : index
    %1 = vector.load %arg1[%c0_1, %c0_2] : memref<2x128xi32, #tpu.memory_space<vmem>>, vector<1x128xi32>
    %2 = tpu.iota {dimensions = array<i32: 0>} : vector<16x128xi32>
    %3 = vector.broadcast %1 : vector<1x128xi32> to vector<16x128xi32>
    %4 = arith.cmpi eq, %3, %2 : vector<16x128xi32>
    %5 = arith.extui %4 : vector<16x128xi1> to vector<16x128xi32>
    %6 = arith.sitofp %5 : vector<16x128xi32> to vector<16x128xf32>
    %7 = arith.truncf %6 : vector<16x128xf32> to vector<16x128xbf16>
    %c1 = arith.constant 1 : index
    %c0_3 = arith.constant 0 : index
    %8 = vector.load %arg1[%c1, %c0_3] : memref<2x128xi32, #tpu.memory_space<vmem>>, vector<1x128xi32>
    %9 = tpu.iota {dimensions = array<i32: 0>} : vector<16x128xi32>
    %10 = vector.broadcast %8 : vector<1x128xi32> to vector<16x128xi32>
    %11 = arith.cmpi eq, %10, %9 : vector<16x128xi32>
    %12 = arith.extui %11 : vector<16x128xi1> to vector<16x128xi32>
    %13 = arith.sitofp %12 : vector<16x128xi32> to vector<16x128xf32>
    %14 = arith.truncf %13 : vector<16x128xf32> to vector<16x128xbf16>
    %15 = tpu.concatenate %0, %7, %14 in 0 : vector<16x128xbf16>, vector<16x128xbf16>, vector<16x128xbf16> -> vector<48x128xbf16>
    %c0_4 = arith.constant 0 : index
    %c0_5 = arith.constant 0 : index
    %16 = vector.load %arg3[%c0_4, %c0_5] : memref<128x48xbf16, #tpu.memory_space<vmem>>, vector<128x48xbf16>
    %cst = arith.constant dense<0.000000e+00> : vector<128x128xf32>
    %17 = tpu.matmul %16, %15, %cst {dimension_numbers = #tpu.dot_dimension_numbers<[1], [0], [0], [1], [0, 0, 1, 1], [], []>} : vector<128x48xbf16>, vector<48x128xbf16>, vector<128x128xf32> -> vector<128x128xf32>
    %c0_6 = arith.constant 0 : index
    %c0_7 = arith.constant 0 : index
    %18 = vector.load %arg4[%c0_6, %c0_7] : memref<128x1xf32, #tpu.memory_space<vmem>>, vector<128x1xf32>
    %19 = vector.broadcast %18 : vector<128x1xf32> to vector<128x128xf32>
    %20 = arith.addf %17, %19 : vector<128x128xf32>
    %cst_8 = arith.constant 0.000000e+00 : f32
    %21 = vector.broadcast %cst_8 : f32 to vector<128x128xf32>
    %22 = arith.maximumf %20, %21 : vector<128x128xf32>
    %c0_9 = arith.constant 0 : index
    %c0_10 = arith.constant 0 : index
    %23 = vector.load %arg5[%c0_9, %c0_10] : memref<128x128xbf16, #tpu.memory_space<vmem>>, vector<128x128xbf16>
    %24 = arith.truncf %22 : vector<128x128xf32> to vector<128x128xbf16>
    %cst_11 = arith.constant dense<0.000000e+00> : vector<128x128xf32>
    %25 = tpu.matmul %23, %24, %cst_11 {dimension_numbers = #tpu.dot_dimension_numbers<[1], [0], [0], [1], [0, 0, 1, 1], [], []>} : vector<128x128xbf16>, vector<128x128xbf16>, vector<128x128xf32> -> vector<128x128xf32>
    %c0_12 = arith.constant 0 : index
    %c0_13 = arith.constant 0 : index
    %26 = vector.load %arg6[%c0_12, %c0_13] : memref<128x1xf32, #tpu.memory_space<vmem>>, vector<128x1xf32>
    %27 = vector.broadcast %26 : vector<128x1xf32> to vector<128x128xf32>
    %28 = arith.addf %25, %27 : vector<128x128xf32>
    %cst_14 = arith.constant 0.000000e+00 : f32
    %29 = vector.broadcast %cst_14 : f32 to vector<128x128xf32>
    %30 = arith.maximumf %28, %29 : vector<128x128xf32>
    %c0_15 = arith.constant 0 : index
    %c0_16 = arith.constant 0 : index
    %31 = vector.load %arg7[%c0_15, %c0_16] : memref<8x128xbf16, #tpu.memory_space<vmem>>, vector<8x128xbf16>
    %32 = arith.truncf %30 : vector<128x128xf32> to vector<128x128xbf16>
    %cst_17 = arith.constant dense<0.000000e+00> : vector<8x128xf32>
    %33 = tpu.matmul %31, %32, %cst_17 {dimension_numbers = #tpu.dot_dimension_numbers<[1], [0], [0], [1], [0, 0, 1, 1], [], []>} : vector<8x128xbf16>, vector<128x128xbf16>, vector<8x128xf32> -> vector<8x128xf32>
    %c0_18 = arith.constant 0 : index
    %c0_19 = arith.constant 0 : index
    %34 = vector.load %arg8[%c0_18, %c0_19] : memref<8x1xf32, #tpu.memory_space<vmem>>, vector<8x1xf32>
    %35 = vector.broadcast %34 : vector<8x1xf32> to vector<8x128xf32>
    %36 = arith.addf %33, %35 : vector<8x128xf32>
    %37 = vector.extract_strided_slice %36 {offsets = [0, 0], sizes = [1, 128], strides = [1, 1]} : vector<8x128xf32> to vector<1x128xf32>
    %38 = arith.negf %37 : vector<1x128xf32>
    %39 = math.exp %38 : vector<1x128xf32>
    %cst_20 = arith.constant 1.000000e+00 : f32
    %40 = vector.broadcast %cst_20 : f32 to vector<1x128xf32>
    %41 = arith.addf %40, %39 : vector<1x128xf32>
    %42 = arith.divf %40, %41 : vector<1x128xf32>
    %c0_21 = arith.constant 0 : index
    %c0_22 = arith.constant 0 : index
    %43 = vector.load %arg9[%c0_21, %c0_22] : memref<1x128xf32, #tpu.memory_space<vmem>>, vector<1x128xf32>
    tpu.vector_store %arg9[%c0_21, %c0_22], %42 {strides = array<i32>} : memref<1x128xf32, #tpu.memory_space<vmem>>, vector<1x128xf32>,
    return
  }
  func.func @transform_0(%arg0: i32) -> (i32, i32) {
    %c0_i32 = arith.constant 0 : i32
    %c0_i32_0 = arith.constant 0 : i32
    return %c0_i32, %arg0 : i32, i32
  }
  func.func @transform_1(%arg0: i32) -> (i32, i32) {
    %c0_i32 = arith.constant 0 : i32
    %c0_i32_0 = arith.constant 0 : i32
    return %c0_i32, %arg0 : i32, i32
  }
  func.func @transform_2(%arg0: i32) -> (i32, i32) {
    %c0_i32 = arith.constant 0 : i32
    %c0_i32_0 = arith.constant 0 : i32
    %c0_i32_1 = arith.constant 0 : i32
    return %c0_i32, %c0_i32_0 : i32, i32
  }
  func.func @transform_3(%arg0: i32) -> (i32, i32) {
    %c0_i32 = arith.constant 0 : i32
    %c0_i32_0 = arith.constant 0 : i32
    %c0_i32_1 = arith.constant 0 : i32
    return %c0_i32, %c0_i32_0 : i32, i32
  }
  func.func @transform_4(%arg0: i32) -> (i32, i32) {
    %c0_i32 = arith.constant 0 : i32
    %c0_i32_0 = arith.constant 0 : i32
    %c0_i32_1 = arith.constant 0 : i32
    return %c0_i32, %c0_i32_0 : i32, i32
  }
  func.func @transform_5(%arg0: i32) -> (i32, i32) {
    %c0_i32 = arith.constant 0 : i32
    %c0_i32_0 = arith.constant 0 : i32
    %c0_i32_1 = arith.constant 0 : i32
    return %c0_i32, %c0_i32_0 : i32, i32
  }
  func.func @transform_6(%arg0: i32) -> (i32, i32) {
    %c0_i32 = arith.constant 0 : i32
    %c0_i32_0 = arith.constant 0 : i32
    %c0_i32_1 = arith.constant 0 : i32
    return %c0_i32, %c0_i32_0 : i32, i32
  }
  func.func @transform_7(%arg0: i32) -> (i32, i32) {
    %c0_i32 = arith.constant 0 : i32
    %c0_i32_0 = arith.constant 0 : i32
    %c0_i32_1 = arith.constant 0 : i32
    return %c0_i32, %c0_i32_0 : i32, i32
  }
  func.func @transform_8(%arg0: i32) -> (i32, i32) {
    %c0_i32 = arith.constant 0 : i32
    %c0_i32_0 = arith.constant 0 : i32
    return %c0_i32, %arg0 : i32, i32
  }
}

</mosaic_0001>

<bundles_post_ra>
// kernel: tpu_custom_call.1
= control target key start
LH: loop header
LB: loop body
LE: loop exit
PB: predicated region body
PF: predicated region fallthrough
CT: control target
= control target key end

     0   :  { %v34_v1 = vlaneseq  ;;  %vm218_vm0 = vcmask 392192   ;;  %v911_v7 = vmov 0   ;;  %v912_v8 = vmov 1.0|1.0   ;;  %s1149_s0 = inlined_call_operand.vmem [shape: s32[2,128], index: 0, kind: input, shape index: {}]   ;;  %s1150_s1 = inlined_call_operand.vmem [shape: bf16[16,128], index: 1, kind: input, shape index: {}]   ;;  %s1151_s2 = inlined_call_operand.vmem [shape: bf16[128,48], index: 2, kind: input, shape index: {}]   ;;  %s1152_s3 = inlined_call_operand.vmem [shape: f32[128,1], index: 3, kind: input, shape index: {}]   ;;  %s1153_s4 = inlined_call_operand.vmem [shape: bf16[128,128], index: 4, kind: input, shape index: {}]   ;;  %s1154_s5 = inlined_call_operand.vmem [shape: f32[128,1], index: 5, kind: input, shape index: {}]   ;;  %s1155_s6 = inlined_call_operand.vmem [shape: bf16[8,128], index: 6, kind: input, shape index: {}]   ;;  %s1156_s7 = inlined_call_operand.vmem [shape: f32[8,1], index: 7, kind: input, shape index: {}]   ;;  %s1157_s8 = inlined_call_operand.hbm [shape: f32[1,128], index: 8, kind: output, shape index: {}]  }
   0x1   :  { %v866_v0 = vld [vmem:[%s1150_s1] sm:$0xff]   ;;  %864 = vset.pattern.permute.xlu0 %v911_v7  ;;  %865 = vset.pattern.permute.xlu1 %v911_v7  ;;  %v83_v10 = vld [vmem:[%s1152_s3 + $0x8] sm:$0xff]  ;;  %v84_v11 = vld [vmem:[%s1152_s3 + $0x10] sm:$0xff] }
   0x2   :  { %v713_v2 = vld [vmem:[%s1149_s0] ss:$0 sm:$0xff]  ;;  %v716_v3 = vld [vmem:[%s1149_s0 + $0x1] ss:$0 sm:$0xff]  ;;  %785 = vmatprep.subr.bf16.mxu0 %v866_v0  ;;  %v35_v4 = vshrl.u32 %v34_v1, 7  ;;  %v868_v12 = vld [vmem:[%s1151_s2 + $0x8] sm:$0xff]   ;;  %110 = vperm.xlu1 %865, %v84_v11  }
   0x3   :  { %v867_v5 = vld [vmem:[%s1151_s2] sm:$0xff]   ;;  %786 = vmatpush3.bf16.msra.mxu0 %v866_v0  ;;  %v869_v13 = vld [vmem:[%s1151_s2 + $0x10] sm:$0xff]   ;;  %v85_v14 = vld [vmem:[%s1152_s3 + $0x18] sm:$0xff] }
   0x4   :  { %v36_v6 = vadd.s32 8, %v35_v4  ;;  %vm41_vm1 = vcmp.eq.s32.totalorder %v713_v2, %v35_v4  ;;  %791 = vmatprep.mubr.msk.bf16.mxu0 %vm218_vm0, %v867_v5  ;;  %vm53_vm2 = vcmp.eq.s32.totalorder %v716_v3, %v35_v4  ;;  %v82_v9 = vld [vmem:[%s1152_s3] sm:$0xff]  ;;  %v87_v16 = vld [vmem:[%s1152_s3 + $0x28] sm:$0xff]  ;;  %v88_v17 = vld [vmem:[%s1152_s3 + $0x30] sm:$0xff] }
   0x5   :  { %100 = vperm.xlu0 %864, %v82_v9   ;;  %v86_v15 = vld [vmem:[%s1152_s3 + $0x20] sm:$0xff]  ;;  %v870_v18 = vld [vmem:[%s1151_s2 + $0x18] sm:$0xff]   ;;  %v91_v22 = vld [vmem:[%s1152_s3 + $0x48] sm:$0xff] }
   0x6   :  { %vm42_vm3 = vcmp.eq.s32.totalorder %v713_v2, %v36_v6  ;;  %vm54_vm4 = vcmp.eq.s32.totalorder %v716_v3, %v36_v6  ;;  %115 = vperm.xlu1 %865, %v85_v14   ;;  %v871_v19 = vld [vmem:[%s1151_s2 + $0x20] sm:$0xff]   ;;  %v89_v21 = vld [vmem:[%s1152_s3 + $0x38] sm:$0xff]  ;;  %v92_v23 = vld [vmem:[%s1152_s3 + $0x50] sm:$0xff] }
   0x7   :  { %vm728_vm5 = vmpackc.low %vm42_vm3, %vm41_vm1  ;;  %v90_v20 = vld [vmem:[%s1152_s3 + $0x40] sm:$0xff] }
   0x8   :  { %787 = vmatprep.subr.msk.bf16.mxu0 %vm728_vm5, %v912_v8  ;;  %vm730_vm6 = vmpackc.low %vm54_vm4, %vm53_vm2 }
   0x9   :  { %788 = vmatpush3.bf16.msk.msra.mxu0 %vm728_vm5, %v912_v8  ;;  %105 = vperm.xlu0 %864, %v83_v10  }
   0xa   :  { %789 = vmatprep.subr.msk.bf16.mxu0 %vm730_vm6, %v912_v8  ;;  %125 = vperm.xlu1 %865, %v87_v16  }
   0xd   :  { %790 = vmatpush3.bf16.msk.msra.mxu0 %vm730_vm6, %v912_v8  ;;  %120 = vperm.xlu0 %864, %v86_v15  }
   0xe   :  { %135 = vperm.xlu1 %865, %v89_v21  }
  0x10   :  { %792 = vmatmul.mubr.msk.bf16.vlgmr.msra.gmra.mrb[0].mxu0 %vm218_vm0, %v868_v12 }
  0x11   :  { %795 = vmatprep.mubr.msk.bf16.mxu0 %vm218_vm0, %v869_v13  ;;  %130 = vperm.xlu0 %864, %v88_v17  }
  0x15   :  { %140 = vperm.xlu0 %864, %v90_v20  }
  0x18   :  { %796 = vmatmul.mubr.msk.bf16.gmra.mrb[4].mxu0 %vm218_vm0, %v870_v18 }
  0x19   :  { %799 = vmatprep.mubr.msk.bf16.mxu0 %vm218_vm0, %v871_v19 }
  0x1a   :  { %13 = vsyncpa [#allocation3], 0  ;;  %v872_v24 = vld [vmem:[%s1151_s2 + $0x28] sm:$0xff]   ;;  %145 = vperm.xlu1 %865, %v91_v22   ;;  %v873_v25 = vld [vmem:[%s1151_s2 + $0x30] sm:$0xff]   ;;  %150 = vperm.xlu0 %864, %v92_v23   ;;  %vm914_vm7 = vmmov 0   ;;  %s915_s30 = smov [#allocation2]  }
  0x1b   :  { %v93_v26 = vld [vmem:[%s1152_s3 + $0x58] sm:$0xff]  ;;  %v94_v27 = vld [vmem:[%s1152_s3 + $0x60] sm:$0xff]  ;;  %v95_v28 = vld [vmem:[%s1152_s3 + $0x68] sm:$0xff]  ;;  %s705_s9 = sshll.u32 %s915_s30, 4  ;;  %s706_s9 = int_to_ptr.vmem [resolvable:$true] %s705_s9 }
  0x1c   :  { %v96_v29 = vld [vmem:[%s1152_s3 + $0x70] sm:$0xff]  ;;  %v874_v30 = vld [vmem:[%s1151_s2 + $0x38] sm:$0xff]   ;;  %v380_v32 = vld [vmem:[%s1154_s5] sm:$0xff]  ;;  %s887_s10 = scalar_lea.vmem %s706_s9, 16  ;;  %p892_p1 = scmp.lt.s32.totalorder %s706_s9, %s706_s9 }
  0x1d   :  { %v97_v31 = vld [vmem:[%s1152_s3 + $0x78] sm:$0xff]  ;;  %v381_v33 = vld [vmem:[%s1154_s5 + $0x8] sm:$0xff]  ;;  %v382_v34 = vld [vmem:[%s1154_s5 + $0x10] sm:$0xff]  ;;  %p888_p0 = scmp.ne.s32.totalorder %s706_s9, %s887_s10 }
  0x1e   :  { %155 = vperm.xlu1 %865, %v93_v26   ;;  %160 = vperm.xlu0 %864, %v94_v27   ;;  %v383_v35 = vld [vmem:[%s1154_s5 + $0x18] sm:$0xff]  ;;  %v384_v36 = vld [vmem:[%s1154_s5 + $0x20] sm:$0xff]  ;;  %v385_v37 = vld [vmem:[%s1154_s5 + $0x28] sm:$0xff] }
  0x1f   :  { %v386_v38 = vld [vmem:[%s1154_s5 + $0x30] sm:$0xff]  ;;  %v387_v39 = vld [vmem:[%s1154_s5 + $0x38] sm:$0xff]  ;;  %v388_v40 = vld [vmem:[%s1154_s5 + $0x40] sm:$0xff] }
  0x20   :  { %800 = vmatmul.mubr.msk.bf16.gmra.mrb[8].mxu0 %vm218_vm0, %v872_v24  ;;  %v389_v41 = vld [vmem:[%s1154_s5 + $0x48] sm:$0xff]  ;;  %v390_v42 = vld [vmem:[%s1154_s5 + $0x50] sm:$0xff]  ;;  %v391_v43 = vld [vmem:[%s1154_s5 + $0x58] sm:$0xff] }
  0x21   :  { %803 = vmatprep.mubr.msk.bf16.mxu0 %vm218_vm0, %v873_v25  ;;  %v392_v44 = vld [vmem:[%s1154_s5 + $0x60] sm:$0xff]  ;;  %v393_v45 = vld [vmem:[%s1154_s5 + $0x68] sm:$0xff]  ;;  %v394_v46 = vld [vmem:[%s1154_s5 + $0x70] sm:$0xff] }
  0x22   :  { %165 = vperm.xlu1 %865, %v95_v28   ;;  %170 = vperm.xlu0 %864, %v96_v29   ;;  %v395_v47 = vld [vmem:[%s1154_s5 + $0x78] sm:$0xff]  ;;  %v646_v48 = vld [vmem:[%s1156_s7] sm:$0xff] }
  0x23   :  { %v875_v49 = vld [vmem:[%s1153_s4] sm:$0xff]  }
  0x24   :  { %823 = vmatprep.mubr.bf16.mxu1 %v875_v49 }
  0x26   :  { %175 = vperm.xlu1 %865, %v97_v31   ;;  %398 = vperm.xlu0 %864, %v380_v32  }
  0x28   :  { %804 = vmatmul.mubr.msk.bf16.gmra.mrb[12].mxu0 %vm218_vm0, %v874_v30 }
  0x2a   :  { %403 = vperm.xlu1 %865, %v381_v33   ;;  %408 = vperm.xlu0 %864, %v382_v34  }
  0x2e   :  { %413 = vperm.xlu1 %865, %v383_v35   ;;  %418 = vperm.xlu0 %864, %v384_v36  }
  0x32   :  { %423 = vperm.xlu1 %865, %v385_v37   ;;  %428 = vperm.xlu0 %864, %v386_v38  }
  0x36   :  { %433 = vperm.xlu1 %865, %v387_v39   ;;  %438 = vperm.xlu0 %864, %v388_v40  }
  0x3a   :  { %443 = vperm.xlu1 %865, %v389_v41   ;;  %448 = vperm.xlu0 %864, %v390_v42  }
  0x3e   :  { %453 = vperm.xlu1 %865, %v391_v43   ;;  %458 = vperm.xlu0 %864, %v392_v44  }
  0x42   :  { %463 = vperm.xlu1 %865, %v393_v45   ;;  %468 = vperm.xlu0 %864, %v394_v46  }
  0x46   :  { %473 = vperm.xlu1 %865, %v395_v47   ;;  %649 = vperm.xlu0 %864, %v646_v48  }
  0x81   :  { %v111_v51 = vpop.permute.xlu1 %110 }
  0x84   :  { %v101_v50 = vpop.permute.xlu0 %100 }
  0x85   :  { %v116_v53 = vpop.permute.xlu1 %115 }
  0x88   :  { %v106_v52 = vpop.permute.xlu0 %105 }
  0x89   :  { %v126_v55 = vpop.permute.xlu1 %125 }
  0x8c   :  { %v121_v54 = vpop.permute.xlu0 %120 }
  0x8d   :  { %v136_v60 = vpop.permute.xlu1 %135 }
  0x90   :  { %v131_v56 = vpop.permute.xlu0 %130 }
  0x94   :  { %v141_v4 = vpop.permute.xlu0 %140 }
  0x99   :  { %v146_v8 = vpop.permute.xlu1 %145  ;;  %v151_v17 = vpop.permute.xlu0 %150 }
  0x9d   :  { %v156_v21 = vpop.permute.xlu1 %155  ;;  %v161_v29 = vpop.permute.xlu0 %160 }
  0xa1   :  { %v166_v34 = vpop.permute.xlu1 %165  ;;  %v171_v41 = vpop.permute.xlu0 %170 }
  0xa5   :  { %v176_v46 = vpop.permute.xlu1 %175 }
  0xe3   :  { %v793_v57 = vpop.f32.mrb[0].mxu0 }
  0xe4   :  { %v286_v58 = vadd.f32 %v793_v57, %v111_v51  ;;  %v277_v59 = vpop.f32.mrb[1].mxu0 }
  0xe5   :  { %v278_v61 = vadd.f32 %v277_v59, %v101_v50  ;;  %v794_v62 = vpop.f32.mrb[2].mxu0  ;;  %v877_v59 = vld [vmem:[%s1153_s4 + $0x10] sm:$0xff]  }
  0xe6   :  { %v289_v63 = vadd.f32 %v794_v62, %v116_v53  ;;  %v280_v0 = vpop.f32.mrb[3].mxu0  ;;  %v342_v2 = vmax.f32 %v286_v58, 0.0  ;;  %v876_v58 = vld [vmem:[%s1153_s4 + $0x8] sm:$0xff]  }
  0xe7   :  { %v281_v1 = vadd.f32 %v280_v0, %v106_v52  ;;  %v340_v5 = vmax.f32 %v278_v61, 0.0  ;;  %v879_v61 = vld [vmem:[%s1153_s4 + $0x20] sm:$0xff]   ;;  %v880_v62 = vld [vmem:[%s1153_s4 + $0x28] sm:$0xff]   ;;  %v882_v0 = vld [vmem:[%s1153_s4 + $0x38] sm:$0xff]  }
  0xe8   :  { %v343_v3 = vmax.f32 %v289_v63, 0.0  ;;  %v881_v63 = vld [vmem:[%s1153_s4 + $0x30] sm:$0xff]  }
  0xe9   :  { %v341_v6 = vmax.f32 %v281_v1, 0.0  ;;  %v913_v1 = vmov 0.0  }
  0xea   :  { %v373_v7 = vpack.c.bf16 %v343_v3, %v342_v2  ;;  %839 = vmatprep.subr.bf16.mxu0 %v913_v1  ;;  %855 = vmatprep.mubr.msk.bf16.mxu0 %vm914_vm7, %v913_v1  ;;  %v399_v2 = vpop.permute.xlu0 %398  ;;  %v404_v3 = vpop.permute.xlu1 %403 }
  0xeb   :  { %v797_v9 = vpop.f32.mrb[4].mxu0  ;;  %v372_v10 = vpack.c.bf16 %v341_v6, %v340_v5 }
  0xec   :  { %v302_v11 = vadd.f32 %v797_v9, %v131_v56  ;;  %v293_v12 = vpop.f32.mrb[5].mxu0 }
  0xed   :  { %v294_v13 = vadd.f32 %v293_v12, %v121_v54  ;;  %v798_v14 = vpop.f32.mrb[6].mxu0  ;;  %807 = vmatprep.subr.bf16.mxu1 %v372_v10 }
  0xee   :  { %v305_v15 = vadd.f32 %v798_v14, %v136_v60  ;;  %v296_v16 = vpop.f32.mrb[7].mxu0  ;;  %808 = vmatpush3.bf16.msra.mxu1 %v372_v10  ;;  %v346_v19 = vmax.f32 %v302_v11, 0.0  ;;  %v878_v60 = vld [vmem:[%s1153_s4 + $0x18] sm:$0xff]   ;;  %v414_v5 = vpop.permute.xlu1 %413 }
  0xef   :  { %v297_v18 = vadd.f32 %v296_v16, %v126_v55  ;;  %809 = vmatprep.subr.bf16.mxu1 %v373_v7  ;;  %v344_v22 = vmax.f32 %v294_v13, 0.0 }
  0xf0   :  { %v347_v20 = vmax.f32 %v305_v15, 0.0 }
  0xf1   :  { %v345_v23 = vmax.f32 %v297_v18, 0.0 }
  0xf2   :  { %v375_v24 = vpack.c.bf16 %v347_v20, %v346_v19  ;;  %810 = vmatpush3.bf16.msra.mxu1 %v373_v7  ;;  %v424_v7 = vpop.permute.xlu1 %423 }
  0xf3   :  { %v374_v25 = vpack.c.bf16 %v345_v23, %v344_v22  ;;  %v801_v26 = vpop.f32.mrb[8].mxu0 }
  0xf4   :  { %v318_v27 = vadd.f32 %v801_v26, %v151_v17  ;;  %v309_v28 = vpop.f32.mrb[9].mxu0 }
  0xf5   :  { %v310_v30 = vadd.f32 %v309_v28, %v141_v4  ;;  %v802_v31 = vpop.f32.mrb[10].mxu0  ;;  %811 = vmatprep.subr.bf16.mxu1 %v374_v25  ;;  %v409_v4 = vpop.permute.xlu0 %408 }
  0xf6   :  { %v321_v32 = vadd.f32 %v802_v31, %v156_v21  ;;  %v312_v33 = vpop.f32.mrb[11].mxu0  ;;  %812 = vmatpush3.bf16.msra.mxu1 %v374_v25  ;;  %v350_v36 = vmax.f32 %v318_v27, 0.0  ;;  %v434_v12 = vpop.permute.xlu1 %433 }
  0xf7   :  { %v313_v35 = vadd.f32 %v312_v33, %v146_v8  ;;  %813 = vmatprep.subr.bf16.mxu1 %v375_v24  ;;  %v348_v38 = vmax.f32 %v310_v30, 0.0 }
  0xf8   :  { %v351_v37 = vmax.f32 %v321_v32, 0.0 }
  0xf9   :  { %v349_v39 = vmax.f32 %v313_v35, 0.0  ;;  %v419_v6 = vpop.permute.xlu0 %418 }
  0xfa   :  { %v377_v40 = vpack.c.bf16 %v351_v37, %v350_v36  ;;  %814 = vmatpush3.bf16.msra.mxu1 %v375_v24  ;;  %v444_v24 = vpop.permute.xlu1 %443 }
  0xfb   :  { %v376_v42 = vpack.c.bf16 %v349_v39, %v348_v38  ;;  %v805_v43 = vpop.f32.mrb[12].mxu0 }
  0xfc   :  { %v334_v44 = vadd.f32 %v805_v43, %v171_v41  ;;  %v325_v45 = vpop.f32.mrb[13].mxu0 }
  0xfd   :  { %v326_v47 = vadd.f32 %v325_v45, %v161_v29  ;;  %v806_v48 = vpop.f32.mrb[14].mxu0  ;;  %815 = vmatprep.subr.bf16.mxu1 %v376_v42  ;;  %v429_v8 = vpop.permute.xlu0 %428 }
  0xfe   :  { %v337_v49 = vadd.f32 %v806_v48, %v176_v46  ;;  %v328_v50 = vpop.f32.mrb[15].mxu0  ;;  %816 = vmatpush3.bf16.msra.mxu1 %v376_v42  ;;  %v354_v52 = vmax.f32 %v334_v44, 0.0  ;;  %v454_v37 = vpop.permute.xlu1 %453 }
  0xff   :  { %v329_v51 = vadd.f32 %v328_v50, %v166_v34  ;;  %817 = vmatprep.subr.bf16.mxu1 %v377_v40  ;;  %v352_v54 = vmax.f32 %v326_v47, 0.0 }
 0x100   :  { %v355_v53 = vmax.f32 %v337_v49, 0.0 }
 0x101   :  { %v353_v55 = vmax.f32 %v329_v51, 0.0  ;;  %v439_v20 = vpop.permute.xlu0 %438 }
 0x102   :  { %v379_v56 = vpack.c.bf16 %v355_v53, %v354_v52  ;;  %818 = vmatpush3.bf16.msra.mxu1 %v377_v40  ;;  %v464_v50 = vpop.permute.xlu1 %463 }
 0x103   :  { %v378_v57 = vpack.c.bf16 %v353_v55, %v352_v54 }
 0x105   :  { %819 = vmatprep.subr.bf16.mxu1 %v378_v57  ;;  %v449_v33 = vpop.permute.xlu0 %448 }
 0x106   :  { %820 = vmatpush3.bf16.msra.mxu1 %v378_v57 }
 0x107   :  { %821 = vmatprep.subr.bf16.mxu1 %v379_v56 }
 0x109   :  { %v459_v45 = vpop.permute.xlu0 %458 }
 0x10a   :  { %822 = vmatpush3.bf16.msra.mxu1 %v379_v56 }
 0x10d   :  { %824 = vmatmul.mubr.bf16.vlgmr.msra.gmra.mrb[0].mxu1 %v876_v58  ;;  %v469_v57 = vpop.permute.xlu0 %468 }
 0x10e   :  { %827 = vmatprep.mubr.bf16.mxu1 %v877_v59 }
 0x115   :  { %828 = vmatmul.mubr.bf16.gmra.mrb[4].mxu1 %v878_v60 }
 0x116   :  { %831 = vmatprep.mubr.bf16.mxu1 %v879_v61 }
 0x11d   :  { %832 = vmatmul.mubr.bf16.gmra.mrb[8].mxu1 %v880_v62  ;;  %v474_v62 = vpop.permute.xlu1 %473 }
 0x11e   :  { %835 = vmatprep.mubr.bf16.mxu1 %v881_v63 }
 0x125   :  { %836 = vmatmul.mubr.bf16.gmra.mrb[12].mxu1 %v882_v0 }
 0x1e0   :  { %v825_v9 = vpop.f32.mrb[0].mxu1 }
 0x1e1   :  { %v567_v10 = vadd.f32 %v825_v9, %v409_v4  ;;  %v558_v11 = vpop.f32.mrb[1].mxu1 }
 0x1e2   :  { %v559_v13 = vadd.f32 %v558_v11, %v399_v2  ;;  %v826_v14 = vpop.f32.mrb[2].mxu1  ;;  %v637_v11 = vld [vmem:[%s1155_s6] sm:$0xf]  ;;  %s891_s6 = scalar_lea.vmem %s706_s9, 32 }
 0x1e3   :  { %v570_v15 = vadd.f32 %v826_v14, %v414_v5  ;;  %v561_v16 = vpop.f32.mrb[3].mxu1  ;;  %v623_v18 = vmax.f32 %v567_v10, 0.0  ;;  %p893_p2 = scmp.lt.s32.totalorder %s891_s6, %s887_s10 }
 0x1e4   :  { %v562_v17 = vadd.f32 %v561_v16, %v404_v3  ;;  %v621_v21 = vmax.f32 %v559_v13, 0.0 }
 0x1e5   :  { %v624_v19 = vmax.f32 %v570_v15, 0.0  ;;  %p894_p3 = por %p893_p2, %p892_p1 }
 0x1e6   :  { %v622_v22 = vmax.f32 %v562_v17, 0.0 }
 0x1e7   :  { %v639_v23 = vpack.c.bf16 %v624_v19, %v623_v18  ;;  %p895_p4 = pnand %p894_p3, %p888_p0 }
 0x1e8   :  { %v638_v25 = vpack.c.bf16 %v622_v22, %v621_v21  ;;  %v829_v26 = vpop.f32.mrb[4].mxu1 }
 0x1e9   :  { %v583_v27 = vadd.f32 %v829_v26, %v429_v8  ;;  %v574_v28 = vpop.f32.mrb[5].mxu1 }
 0x1ea   :  { %v575_v29 = vadd.f32 %v574_v28, %v419_v6  ;;  %v830_v30 = vpop.f32.mrb[6].mxu1  ;;  %840 = vmatpush3.bf16.msra.mxu0 %v638_v25 }
 0x1eb   :  { %v586_v31 = vadd.f32 %v830_v30, %v434_v12  ;;  %v577_v32 = vpop.f32.mrb[7].mxu1  ;;  %841 = vmatprep.subr.bf16.mxu0 %v913_v1  ;;  %v627_v35 = vmax.f32 %v583_v27, 0.0  ;;  %v650_v12 = vpop.permute.xlu0 %649 }
 0x1ec   :  { %v578_v34 = vadd.f32 %v577_v32, %v424_v7  ;;  %v625_v38 = vmax.f32 %v575_v29, 0.0 }
 0x1ed   :  { %v628_v36 = vmax.f32 %v586_v31, 0.0 }
 0x1ee   :  { %v626_v39 = vmax.f32 %v578_v34, 0.0  ;;  %842 = vmatpush3.bf16.msra.mxu0 %v639_v23 }
 0x1ef   :  { %v641_v40 = vpack.c.bf16 %v628_v36, %v627_v35  ;;  %843 = vmatprep.subr.bf16.mxu0 %v913_v1 }
 0x1f0   :  { %v640_v41 = vpack.c.bf16 %v626_v39, %v625_v38  ;;  %v833_v42 = vpop.f32.mrb[8].mxu1 }
 0x1f1   :  { %v599_v43 = vadd.f32 %v833_v42, %v449_v33  ;;  %v590_v44 = vpop.f32.mrb[9].mxu1 }
 0x1f2   :  { %v591_v46 = vadd.f32 %v590_v44, %v439_v20  ;;  %v834_v47 = vpop.f32.mrb[10].mxu1  ;;  %844 = vmatpush3.bf16.msra.mxu0 %v640_v41 }
 0x1f3   :  { %v602_v48 = vadd.f32 %v834_v47, %v454_v37  ;;  %v593_v49 = vpop.f32.mrb[11].mxu1  ;;  %845 = vmatprep.subr.bf16.mxu0 %v913_v1  ;;  %v631_v52 = vmax.f32 %v599_v43, 0.0 }
 0x1f4   :  { %v594_v51 = vadd.f32 %v593_v49, %v444_v24  ;;  %v629_v54 = vmax.f32 %v591_v46, 0.0 }
 0x1f5   :  { %v632_v53 = vmax.f32 %v602_v48, 0.0 }
 0x1f6   :  { %v630_v55 = vmax.f32 %v594_v51, 0.0  ;;  %846 = vmatpush3.bf16.msra.mxu0 %v641_v40 }
 0x1f7   :  { %v643_v56 = vpack.c.bf16 %v632_v53, %v631_v52  ;;  %847 = vmatprep.subr.bf16.mxu0 %v913_v1 }
 0x1f8   :  { %v642_v58 = vpack.c.bf16 %v630_v55, %v629_v54  ;;  %v837_v59 = vpop.f32.mrb[12].mxu1 }
 0x1f9   :  { %v615_v60 = vadd.f32 %v837_v59, %v469_v57  ;;  %v606_v61 = vpop.f32.mrb[13].mxu1 }
 0x1fa   :  { %v607_v63 = vadd.f32 %v606_v61, %v459_v45  ;;  %v838_v0 = vpop.f32.mrb[14].mxu1  ;;  %848 = vmatpush3.bf16.msra.mxu0 %v642_v58 }
 0x1fb   :  { %v618_v2 = vadd.f32 %v838_v0, %v474_v62  ;;  %v609_v3 = vpop.f32.mrb[15].mxu1  ;;  %849 = vmatprep.subr.bf16.mxu0 %v913_v1  ;;  %v635_v5 = vmax.f32 %v615_v60, 0.0 }
 0x1fc   :  { %v610_v4 = vadd.f32 %v609_v3, %v464_v50  ;;  %v633_v7 = vmax.f32 %v607_v63, 0.0 }
 0x1fd   :  { %v636_v6 = vmax.f32 %v618_v2, 0.0 }
 0x1fe   :  { %v634_v8 = vmax.f32 %v610_v4, 0.0  ;;  %850 = vmatpush3.bf16.msra.mxu0 %v643_v56 }
 0x1ff   :  { %v645_v9 = vpack.c.bf16 %v636_v6, %v635_v5  ;;  %851 = vmatprep.subr.bf16.mxu0 %v913_v1 }
 0x200   :  { %v644_v10 = vpack.c.bf16 %v634_v8, %v633_v7 }
 0x202   :  { %852 = vmatpush3.bf16.msra.mxu0 %v644_v10 }
 0x203   :  { %853 = vmatprep.subr.bf16.mxu0 %v913_v1 }
 0x206   :  { %854 = vmatpush3.bf16.msra.mxu0 %v645_v9 }
 0x209   :  { %856 = vmatmul.mubr.bf16.vlgmr.msra.gmra.mrb[16].mxu0 %v637_v11 }
 0x2dc   :  { %v686_v13 = vpop.f32.mrb[16].mxu0 }
 0x2dd   :  { %v687_v14 = vadd.f32 %v686_v13, %v650_v12  ;;  %v857_v15 = vpop.f32.mrb[17].mxu0 }
 0x2de   :  { %v689_v16 = vpop.f32.mrb[18].mxu0 }
 0x2df   :  { %v748_v17 = vmul.f32 -1.442695, %v687_v14  ;;  %v858_v18 = vpop.f32.mrb[19].mxu0 }
 0x2e1   :  { %883 = vpow2.f32 %v748_v17 }
 0x2eb   :  { %v884_v19 = vpop.eup %883 }
 0x2ec   :  { %v695_v20 = vadd.f32 1.0, %v884_v19 }
 0x2ee   :  { %885 = vrcp.f32 %v695_v20 }
 0x2f8   :  { %v886_v1 = vpop.eup %885 }
 0x2f9   :  { %698 = vst [vmem:[#allocation2] sm:$0x1] %v886_v1 }
 0x2fa   :  { %898 = shalt.err (!%p895_p4)
}
 0x2fb   :  { %s899_s0 = scalar_lea.hbm %s1157_s8, 16 }
 0x2fc   :  { %p900_p5 = scmp.ne.s32.totalorder %s1157_s8, %s899_s0  ;;  %p903_p6 = scmp.lt.u32.totalorder %s899_s0, %s1157_s8 }
 0x2fe   :  { %p905_p7 = pnand %p903_p6, %p900_p5 }
 0x300   :  { %908 = shalt.err (!%p905_p7)
}
 0x301   :  { %708 = dma.vmem_to_hbm [thread:$0]  %s706_s9, 16, %s1157_s8, [#allocation3]  }
 0x302   :  { %909 = dma.done.wait [#allocation3], 16  }
 0x303   :  { %910 = vsyncadd [#allocation3], 4294967280 }
 0x304   :  { %712 = vsyncpa [#allocation3], 1 }

</bundles_post_ra>
